<compile_context>
chip_gen: v5e
topology: v5e:2x2
jax: 0.10.0
libtpu: 0.0.40
codegen_flags: <defaults>
</compile_context>

<pallas_src>
import functools

import jax
import jax.numpy as jnp
from jax.experimental import pallas as pl
from jax.experimental.pallas import tpu as pltpu


def _round_up(x: int, m: int) -> int:
    return ((x + m - 1) // m) * m


# ---------------------------------------------------------------------------
# Kernel: one fused stacked-K matmul + bias + gelu + projection + bias.
#   xy_ref : (tile_b, Kp)  bf16   ([x || y], zero-padded K)
#   w12    : (Kp, Hp)      bf16   ([W1 ; W2], resident)
#   b1     : (1, Hp)       f32
#   w3     : (Hp, Op)      bf16   (resident)
#   b3     : (1, Op)       f32
#   o_ref  : (tile_b, Op)  f32
# ---------------------------------------------------------------------------
def aux_model_kernel(xy_ref, w12_ref, b1_ref, w3_ref, b3_ref, o_ref):
    # h = gelu([x||y] @ W12 + b1)        (single MXU matmul, f32 accumulate)
    h = jnp.dot(xy_ref[...], w12_ref[...], preferred_element_type=jnp.float32)
    h = jax.nn.gelu(h + b1_ref[...], approximate=True)
    # out = h @ W3 + b3                   (bf16 operands, f32 accumulate)
    out = (
        jnp.dot(h.astype(w3_ref.dtype), w3_ref[...],
                preferred_element_type=jnp.float32)
        + b3_ref[...]
    )
    o_ref[...] = out.astype(o_ref.dtype)


# ---------------------------------------------------------------------------
# One-time parameter packing: stack W1/W2 along K, cast to bf16, lane-pad.
# ---------------------------------------------------------------------------
def pack_params(params, compute_dtype=jnp.bfloat16):
    w1, w2, b1, w3, b3 = params
    D, H = w1.shape
    O = w3.shape[1]
    Kp = _round_up(2 * D, 128)
    Hp = _round_up(H, 128)
    Op = _round_up(O, 128)

    w12 = jnp.concatenate([w1, w2], axis=0).astype(compute_dtype)       # (2D, H)
    w12p = jnp.zeros((Kp, Hp), compute_dtype).at[: 2 * D, :H].set(w12)
    b1p = jnp.zeros((1, Hp), jnp.float32).at[:, :H].set(
        b1.reshape(1, H).astype(jnp.float32))
    w3p = jnp.zeros((Hp, Op), compute_dtype).at[:H, :O].set(
        w3.astype(compute_dtype))
    b3p = jnp.zeros((1, Op), jnp.float32).at[:, :O].set(
        b3.reshape(1, O).astype(jnp.float32))

    dims = (D, H, O, Kp, Hp, Op)
    return (w12p, b1p, w3p, b3p), dims


# ---------------------------------------------------------------------------
# Pallas implementation of Mapper.forward(x, y) -> result.
# Returns a jitted callable (x, y) -> (B, O) so the surrounding cast / concat /
# pad / slice plumbing fuses with the pallas_call.
# ---------------------------------------------------------------------------
def make_mapper_forward(packed_params, dims, *, batch_size, tile_b=512,
                        out_dtype=jnp.float32):
    w12p, b1p, w3p, b3p = packed_params
    D, H, O, Kp, Hp, Op = dims
    B = int(batch_size)
    compute_dtype = w12p.dtype

    # Batch tiling: multiple of 8, clamped to the (padded) batch; batch is
    # zero-padded to a multiple of tile_b so any B works.
    tile_b = _round_up(max(8, min(tile_b, _round_up(B, 8))), 8)
    Bp = _round_up(B, tile_b)
    grid = (Bp // tile_b,)

    # VMEM budget: resident weights + double-buffered activation/out tiles.
    in_bytes = jnp.dtype(compute_dtype).itemsize
    out_bytes = jnp.dtype(out_dtype).itemsize
    est = (
        (Kp * Hp + Hp * Op) * in_bytes          # resident W12, W3
        + (Hp + Op) * 4                         # biases (f32)
        + 2 * tile_b * Kp * in_bytes            # double-buffered xy tile
        + 2 * tile_b * Op * out_bytes           # double-buffered out tile
    )
    vmem_limit = int(min(max(2 * est, 32 * 1024 * 1024), 64 * 1024 * 1024))

    call = pl.pallas_call(
        aux_model_kernel,
        out_shape=jax.ShapeDtypeStruct((Bp, Op), out_dtype),
        grid_spec=pltpu.PrefetchScalarGridSpec(
            num_scalar_prefetch=0,
            grid=grid,
            in_specs=[
                pl.BlockSpec((tile_b, Kp), lambda i: (i, 0)),   # [x||y] tile
                pl.BlockSpec((Kp, Hp), lambda i: (0, 0)),       # W12 (resident)
                pl.BlockSpec((1, Hp), lambda i: (0, 0)),        # b1
                pl.BlockSpec((Hp, Op), lambda i: (0, 0)),       # W3 (resident)
                pl.BlockSpec((1, Op), lambda i: (0, 0)),        # b3
            ],
            out_specs=pl.BlockSpec((tile_b, Op), lambda i: (i, 0)),
        ),
        compiler_params=pltpu.CompilerParams(
            dimension_semantics=("parallel",),   # batch axis -> megacore
            vmem_limit_bytes=vmem_limit,
        ),
    )

    @jax.jit
    def forward(x, y):
        # Build the stacked, bf16, lane-padded activation operand [x || y].
        xy = jnp.concatenate([x, y], axis=-1).astype(compute_dtype)     # (B, 2D)
        if (Bp, Kp) != (B, 2 * D):
            xy = jnp.zeros((Bp, Kp), compute_dtype).at[:B, : 2 * D].set(xy)
        out_p = call(xy, w12p, b1p, w3p, b3p)
        # Strip batch / lane padding.  (The discarded aux_model_stu branch of
        # the PyTorch Mapper does not affect the result, so it is omitted.)
        return out_p[:B, :O]

    return forward


# ---------------------------------------------------------------------------
# Synthetic aux-model parameters + pure-JAX reference (mirrors the bf16 casts).
# ---------------------------------------------------------------------------
def init_params(key, D, H, O, dtype=jnp.float32):
    k1, k2, k3, k4, k5 = jax.random.split(key, 5)
    w1 = jax.random.normal(k1, (D, H), dtype) * 0.02
    w2 = jax.random.normal(k2, (D, H), dtype) * 0.02
    b1 = jax.random.normal(k3, (1, H), dtype) * 0.01
    w3 = jax.random.normal(k4, (H, O), dtype) * 0.02
    b3 = jax.random.normal(k5, (1, O), dtype) * 0.01
    return (w1, w2, b1, w3, b3)


def _reference(x, y, params, compute_dtype=jnp.bfloat16):
    w1, w2, b1, w3, b3 = params
    q = lambda a: a.astype(compute_dtype).astype(jnp.float32)
    h = jax.nn.gelu(q(x) @ q(w1) + q(y) @ q(w2) + b1.reshape(1, -1),
                    approximate=True)
    return q(h) @ q(w3) + b3.reshape(1, -1)


if __name__ == "__main__":
    # Small, module-consistent shapes (x, y are [B, D] feature vectors).
    B, D, H, O = 16, 32, 64, 32

    key = jax.random.PRNGKey(0)
    kx, ky, kp = jax.random.split(key, 3)
    x = jax.random.normal(kx, (B, D), jnp.float32)
    y = jax.random.normal(ky, (B, D), jnp.float32)
    params = init_params(kp, D, H, O)

    packed, dims = pack_params(params)

    # tile_b=8 here just to exercise a multi-step grid at toy sizes;
    # production calls should use the default (large) tile_b.
    mapper = make_mapper_forward(packed, dims, batch_size=B, tile_b=8)
    out = jax.block_until_ready(mapper(x, y))

    ref = _reference(x, y, params)
    assert out.shape == (B, O)
    assert jnp.allclose(out, ref, atol=1e-3, rtol=1e-2), float(
        jnp.max(jnp.abs(out - ref)))

    print("KERNEL_OK")
</pallas_src>

<mosaic_0001>
module attributes {stable_mosaic.version = 11 : i64} {
  func.func @aux_model_kernel(%arg0: i32, %arg1: memref<8x128xbf16, #tpu.memory_space<vmem>>, %arg2: memref<128x128xbf16, #tpu.memory_space<vmem>>, %arg3: memref<1x128xf32, #tpu.memory_space<vmem>>, %arg4: memref<128x128xbf16, #tpu.memory_space<vmem>>, %arg5: memref<1x128xf32, #tpu.memory_space<vmem>>, %arg6: memref<8x128xf32, #tpu.memory_space<vmem>>) attributes {dimension_semantics = [#tpu.dimension_semantics<parallel>], iteration_bounds = array<i64: 2>, scalar_prefetch = 0 : i64, scratch_operands = 0 : i64, tpu.core_type = #tpu.core_type<tc>, window_params = [{transform_indices = @transform_0, window_bounds = array<i64: 8, 128>}, {pipeline_mode = #tpu.pipeline_mode<synchronous>, transform_indices = @transform_1, window_bounds = array<i64: 128, 128>}, {pipeline_mode = #tpu.pipeline_mode<synchronous>, transform_indices = @transform_2, window_bounds = array<i64: 1, 128>}, {pipeline_mode = #tpu.pipeline_mode<synchronous>, transform_indices = @transform_3, window_bounds = array<i64: 128, 128>}, {pipeline_mode = #tpu.pipeline_mode<synchronous>, transform_indices = @transform_4, window_bounds = array<i64: 1, 128>}, {transform_indices = @transform_5, window_bounds = array<i64: 8, 128>}]} {
    %c0 = arith.constant 0 : index
    %c0_0 = arith.constant 0 : index
    %0 = vector.load %arg1[%c0, %c0_0] : memref<8x128xbf16, #tpu.memory_space<vmem>>, vector<8x128xbf16>
    %c0_1 = arith.constant 0 : index
    %c0_2 = arith.constant 0 : index
    %1 = vector.load %arg2[%c0_1, %c0_2] : memref<128x128xbf16, #tpu.memory_space<vmem>>, vector<128x128xbf16>
    %cst = arith.constant dense<0.000000e+00> : vector<8x128xf32>
    %2 = tpu.matmul %0, %1, %cst {dimension_numbers = #tpu.dot_dimension_numbers<[1], [0], [0], [1], [0, 0, 1, 1], [], []>} : vector<8x128xbf16>, vector<128x128xbf16>, vector<8x128xf32> -> vector<8x128xf32>
    %c0_3 = arith.constant 0 : index
    %c0_4 = arith.constant 0 : index
    %3 = vector.load %arg3[%c0_3, %c0_4] : memref<1x128xf32, #tpu.memory_space<vmem>>, vector<1x128xf32>
    %4 = vector.broadcast %3 : vector<1x128xf32> to vector<8x128xf32>
    %5 = arith.addf %2, %4 : vector<8x128xf32>
    %6 = arith.mulf %5, %5 : vector<8x128xf32>
    %7 = arith.mulf %5, %6 : vector<8x128xf32>
    %cst_5 = arith.constant 4.471500e-02 : f32
    %8 = vector.broadcast %cst_5 : f32 to vector<8x128xf32>
    %9 = arith.mulf %8, %7 : vector<8x128xf32>
    %10 = arith.addf %5, %9 : vector<8x128xf32>
    %cst_6 = arith.constant 0.797884583 : f32
    %11 = vector.broadcast %cst_6 : f32 to vector<8x128xf32>
    %12 = arith.mulf %11, %10 : vector<8x128xf32>
    %13 = math.tanh %12 : vector<8x128xf32>
    %cst_7 = arith.constant 1.000000e+00 : f32
    %14 = vector.broadcast %cst_7 : f32 to vector<8x128xf32>
    %15 = arith.addf %14, %13 : vector<8x128xf32>
    %cst_8 = arith.constant 5.000000e-01 : f32
    %16 = vector.broadcast %cst_8 : f32 to vector<8x128xf32>
    %17 = arith.mulf %16, %15 : vector<8x128xf32>
    %18 = arith.mulf %5, %17 : vector<8x128xf32>
    %19 = arith.truncf %18 : vector<8x128xf32> to vector<8x128xbf16>
    %c0_9 = arith.constant 0 : index
    %c0_10 = arith.constant 0 : index
    %20 = vector.load %arg4[%c0_9, %c0_10] : memref<128x128xbf16, #tpu.memory_space<vmem>>, vector<128x128xbf16>
    %cst_11 = arith.constant dense<0.000000e+00> : vector<8x128xf32>
    %21 = tpu.matmul %19, %20, %cst_11 {dimension_numbers = #tpu.dot_dimension_numbers<[1], [0], [0], [1], [0, 0, 1, 1], [], []>} : vector<8x128xbf16>, vector<128x128xbf16>, vector<8x128xf32> -> vector<8x128xf32>
    %c0_12 = arith.constant 0 : index
    %c0_13 = arith.constant 0 : index
    %22 = vector.load %arg5[%c0_12, %c0_13] : memref<1x128xf32, #tpu.memory_space<vmem>>, vector<1x128xf32>
    %23 = vector.broadcast %22 : vector<1x128xf32> to vector<8x128xf32>
    %24 = arith.addf %21, %23 : vector<8x128xf32>
    %c0_14 = arith.constant 0 : index
    %c0_15 = arith.constant 0 : index
    %25 = vector.load %arg6[%c0_14, %c0_15] : memref<8x128xf32, #tpu.memory_space<vmem>>, vector<8x128xf32>
    tpu.vector_store %arg6[%c0_14, %c0_15], %24 {strides = array<i32>} : memref<8x128xf32, #tpu.memory_space<vmem>>, vector<8x128xf32>,
    return
  }
  func.func @transform_0(%arg0: i32) -> (i32, i32) {
    %c0_i32 = arith.constant 0 : i32
    %c0_i32_0 = arith.constant 0 : i32
    return %arg0, %c0_i32 : i32, i32
  }
  func.func @transform_1(%arg0: i32) -> (i32, i32) {
    %c0_i32 = arith.constant 0 : i32
    %c0_i32_0 = arith.constant 0 : i32
    %c0_i32_1 = arith.constant 0 : i32
    return %c0_i32, %c0_i32_0 : i32, i32
  }
  func.func @transform_2(%arg0: i32) -> (i32, i32) {
    %c0_i32 = arith.constant 0 : i32
    %c0_i32_0 = arith.constant 0 : i32
    %c0_i32_1 = arith.constant 0 : i32
    return %c0_i32, %c0_i32_0 : i32, i32
  }
  func.func @transform_3(%arg0: i32) -> (i32, i32) {
    %c0_i32 = arith.constant 0 : i32
    %c0_i32_0 = arith.constant 0 : i32
    %c0_i32_1 = arith.constant 0 : i32
    return %c0_i32, %c0_i32_0 : i32, i32
  }
  func.func @transform_4(%arg0: i32) -> (i32, i32) {
    %c0_i32 = arith.constant 0 : i32
    %c0_i32_0 = arith.constant 0 : i32
    %c0_i32_1 = arith.constant 0 : i32
    return %c0_i32, %c0_i32_0 : i32, i32
  }
  func.func @transform_5(%arg0: i32) -> (i32, i32) {
    %c0_i32 = arith.constant 0 : i32
    %c0_i32_0 = arith.constant 0 : i32
    return %arg0, %c0_i32 : i32, i32
  }
}

</mosaic_0001>

<bundles_post_ra>
// kernel: forward.1
= control target key start
LH: loop header
LB: loop body
LE: loop exit
PB: predicated region body
PF: predicated region fallthrough
CT: control target
= control target key end

     0   :  { %10 = vsyncpa [#allocation3], 0  ;;  %s902_s0 = inlined_call_operand.vmem [shape: bf16[16,128], index: 0, kind: input, shape index: {}]   ;;  %s903_s1 = inlined_call_operand.hbm [shape: bf16[128,128], index: 1, kind: input, shape index: {}]   ;;  %s904_s2 = inlined_call_operand.vmem [shape: f32[1,128], index: 2, kind: input, shape index: {}]   ;;  %s905_s3 = inlined_call_operand.vmem [shape: bf16[128,128], index: 3, kind: input, shape index: {}]   ;;  %s906_s4 = inlined_call_operand.vmem [shape: f32[1,128], index: 4, kind: input, shape index: {}]   ;;  %s907_s5 = inlined_call_operand.hbm [shape: f32[16,128], index: 5, kind: output, shape index: {}]  }
   0x1   :  { %11 = vsyncpa [#allocation4], 0 }
   0x2   :  { %13 = vsyncpa [#allocation4 + $0x1], 0  ;;  %s777_s18 = smov 0   ;;  %s779_s19 = smov 0  }
   0x3   :  { %s781_s20 = smov 0   ;;  %s783_s21 = smov 0  }
   0x4 LB: > { %s798_s22 = sadd.s32 4294967295, %s742_s21   ;;  %s498_s23 = sadd.s32 4294967294, %s742_s21   ;;  %s742_s21 = sphi %s783_s21, %s913_s21   ;;  %s738_s20 = sphi %s781_s20, %s912_s20   ;;  %s734_s19 = sphi %s779_s19, %s911_s19   ;;  %s730_s18 = sphi %s777_s18, %s910_s18  }
   0x5   : > { %s802_s24 = sadd.s32 1, %s742_s21   ;;  %s136_s25 = sadd.s32 1, %s738_s20 }
   0x6   : > { %s133_s26 = ssub.s32 %s742_s21, %s802_s24  ;;  %p146_p0 = scmp.ne.s32.totalorder %s738_s20, %s734_s19 }
   0x7   : > { %p134_p1 = scmp.eq.s32.totalorder %s133_s26, 0  ;;  %p147_p2 = scmp.eq.s32.totalorder %s798_s22, 1 }
   0x8   : > { %p152_p3 = scmp.ne.s32.totalorder %s734_s19, %s730_s18  ;;  %p153_p4 = scmp.eq.s32.totalorder %s498_s23, 1 }
   0x9   : > { %s813_s27 = scalar_select %p134_p1, %s738_s20, %s136_s25  }
   0xa   : > { %p815_p5 = por %p147_p2, %p146_p0  ;;  %p819_p6 = por %p153_p4, %p152_p3 }
   0xb   : > { %p499_p7 = scmp.ge.s32.totalorder %s742_s21, 1  ;;  %p160_p8 = scmp.lt.s32.totalorder %s742_s21, 3 }
   0xc   : > { %p604_p9 = scmp.eq.s32.totalorder %s798_s22, 0  ;;  %s171_s7 = sshll.u32 %s903_s1, 4  ;;  %s172_s7 = int_to_ptr.hbm [resolvable:$true] %s171_s7 }
   0xd   : > { %p161_p10 = pnand %p499_p7, %p160_p8  ;;  %s744_s8 = smov [#allocation2]  }
   0xe   : > { %s173_s9 = sshll.u32 %s744_s8, 4  ;;  %s745_s10 = smov 64   ;;  %s174_s9 = int_to_ptr.vmem [resolvable:$true] %s173_s9 }
   0xf   : > { %p596_p11 = pneg %p161_p10  ;;  %s746_s11 = smov 4  }
  0x10   : > { %205 = sbr.rel (%p161_p10) target bundleno = 341 (0x155), region = 40 }
  0x11   : > { %p597_p12 = pnand %p604_p9, %p596_p11 }
  0x13   : > { %599 = dma.hbm_to_vmem [thread:$0]  (!%p597_p12), %s172_s7, 1024, %s174_s9, [#allocation3], %s745_s10, %s745_s10, %s746_s11  }
  0x15   : > { %721 = dma.done.wait (%p604_p9), [#allocation3], 1024  }
  0x16   : > { %723 = vsyncadd (%p604_p9), [#allocation3], 4294966272  ;;  %v581_v0 = vld [vmem:[#allocation2 + $0x38] sm:$0xff]  ;;  %v580_v1 = vld [vmem:[#allocation2 + $0x30] sm:$0xff]  ;;  %p233_p13 = scmp.lt.s32.totalorder %s798_s22, 1  ;;  %s230_s25 = sand.u32 1, %s734_s19  }
  0x17   : > { %306 = vmatpush.bf16.msra.mxu0 %v581_v0  ;;  %v589_v2 = vld [vmem:[%s905_s3 + $0x38] sm:$0xff]  ;;  %v579_v3 = vld [vmem:[#allocation2 + $0x28] sm:$0xff]  ;;  %v578_v4 = vld [vmem:[#allocation2 + $0x20] sm:$0xff]  ;;  %s571_s26 = sshll.u32 %s798_s22, 3  ;;  %s504_s30 = sshll.u32 %s230_s25, 3 }
  0x18   : > { %397 = vmatpush.bf16.msra.mxu1 %v589_v2  ;;  %v577_v5 = vld [vmem:[#allocation2 + $0x18] sm:$0xff]  ;;  %v576_v6 = vld [vmem:[#allocation2 + $0x10] sm:$0xff]  ;;  %s234_s14 = scalar_select %p233_p13, %s798_s22, 1  ;;  %v575_v7 = vld [vmem:[#allocation2 + $0x8] sm:$0xff] }
  0x19   : > { %v574_v8 = vld [vmem:[#allocation2] sm:$0xff]  ;;  %v588_v10 = vld [vmem:[%s905_s3 + $0x30] sm:$0xff]  ;;  %v587_v11 = vld [vmem:[%s905_s3 + $0x28] sm:$0xff]  ;;  %s422_s8 = scalar_lea.hbm %s907_s5, %s571_s26  ;;  %s232_s11 = scalar_lea.vmem [#allocation5], %s504_s30 }
  0x1a   : > { %s505_s15 = sshll.u32 %s234_s14, 2  ;;  %v586_v12 = vld [vmem:[%s905_s3 + $0x20] sm:$0xff]  ;;  %v585_v13 = vld [vmem:[%s905_s3 + $0x18] sm:$0xff]  ;;  %v584_v14 = vld [vmem:[%s905_s3 + $0x10] sm:$0xff]  ;;  %s424_s12 = sshll.u32 %s232_s11, 4  ;;  %s425_s12 = int_to_ptr.vmem [resolvable:$true] %s424_s12 }
  0x1b   : > { %307 = vmatpush.bf16.msra.mxu0 %v580_v1  ;;  %s236_s23 = scalar_lea.vmem %s902_s0, %s505_s15  ;;  %v583_v15 = vld [vmem:[%s905_s3 + $0x8] sm:$0xff]  ;;  %v582_v16 = vld [vmem:[%s905_s3] sm:$0xff]  ;;  %s426_s13 = sshll.u32 %s422_s8, 4  ;;  %s427_s13 = int_to_ptr.hbm [resolvable:$true] %s426_s13 }
  0x1c   : > { %v237_v9 = vld [vmem:[%s236_s23] sm:$0xf]  ;;  %398 = vmatpush.bf16.msra.mxu1 %v588_v10  ;;  %s412_s14 = scalar_lea.sflag [#allocation4], %s230_s25  ;;  %s690_s22 = sshra.s32 %s427_s13, 4  ;;  %s691_s22 = int_to_ptr.hbm [resolvable:$true] %s690_s22 }
  0x1d   : > { %v642_v17 = vld [vmem:[%s904_s2] ss:$0 sm:$0xff]  ;;  %s692_s15 = scalar_lea.hbm %s691_s22, 8  ;;  %s696_s23 = scalar_lea.hbm %s907_s5, 16 }
  0x1e   : > { %v643_v31 = vld [vmem:[%s906_s4] ss:$0 sm:$0xff]  ;;  %p693_p0 = scmp.ne.s32.totalorder %s691_s22, %s692_s15  ;;  %p697_p3 = scmp.lt.s32.totalorder %s691_s22, %s907_s5 }
  0x1f   : > { %308 = vmatpush.bf16.msra.mxu0 %v579_v3  ;;  %p698_p4 = scmp.lt.s32.totalorder %s696_s23, %s692_s15 }
  0x20   : > { %399 = vmatpush.bf16.msra.mxu1 %v587_v11  ;;  %p694_p1 = pnand %p693_p0, %p815_p5 }
  0x21   : > { %p699_p7 = por %p698_p4, %p697_p3 }
  0x22   : > { %p695_p2 = pneg %p694_p1 }
  0x23   : > { %309 = vmatpush.bf16.msra.mxu0 %v578_v4 }
  0x24   : > { %400 = vmatpush.bf16.msra.mxu1 %v586_v12  ;;  %p700_p8 = pnand %p699_p7, %p695_p2 }
  0x27   : > { %310 = vmatpush.bf16.msra.mxu0 %v577_v5 }
  0x28   : > { %401 = vmatpush.bf16.msra.mxu1 %v585_v13 }
  0x2b   : > { %311 = vmatpush.bf16.msra.mxu0 %v576_v6 }
  0x2c   : > { %402 = vmatpush.bf16.msra.mxu1 %v584_v14 }
  0x2f   : > { %312 = vmatpush.bf16.msra.mxu0 %v575_v7 }
  0x30   : > { %403 = vmatpush.bf16.msra.mxu1 %v583_v15 }
  0x33   : > { %313 = vmatpush.bf16.msra.mxu0 %v574_v8 }
  0x34   : > { %404 = vmatpush.bf16.msra.mxu1 %v582_v16 }
  0x36   : > { %314 = vmatmul.bf16.vlgmr.msra.gmra.mxu0 %v237_v9 }
  0xb3   : > { %v315_v18 = vpop.f32.mrf.mxu0 }
  0xb4   : > { %v316_v19 = vadd.f32 %v642_v17, %v315_v18 }
  0xb6   : > { %v319_v20 = vmul.f32 %v316_v19, %v316_v19 }
  0xb8   : > { %v320_v21 = vmul.f32 %v319_v20, %v316_v19 }
  0xba   : > { %v321_v22 = vmul.f32 0.044715, %v320_v21 }
  0xbb   : > { %v317_v23 = vpop.f32.mrf.mxu0 }
  0xbc   : > { %v322_v24 = vadd.f32 %v321_v22, %v316_v19 }
  0xbe   : > { %v323_v25 = vmul.f32 0.7978846, %v322_v24 }
  0xc0   : > { %644 = vtanh.f32 %v323_v25 }
  0xc6   : > { %v645_v26 = vpop.eup %644 }
  0xc7   : > { %v325_v27 = vadd.f32 1.0, %v645_v26 }
  0xc9   : > { %v326_v28 = vmul.f32 0.5, %v325_v27 }
  0xcb   : > { %v327_v29 = vmul.f32 %v326_v28, %v316_v19 }
  0xcd   : > { %v328_v30 = vpack.c.bf16 %v327_v29, %v327_v29 }
  0xcf   : > { %405 = vmatmul.bf16.vlgmr.msra.gmra.mxu1 %v328_v30 }
 0x14c   : > { %v406_v32 = vpop.f32.mrf.mxu1 }
 0x14d   : > { %v407_v33 = vadd.f32 %v643_v31, %v406_v32 }
 0x14f   : > { %410 = vst [vmem:[%s232_s11] sm:$0xff] %v407_v33 }
 0x150   : > { %703 = shalt.err (!%p700_p8)
}
 0x151   : > { %594 = dma.vmem_to_hbm [thread:$0]  (%p815_p5), %s425_s12, 128, %s427_s13, %s412_s14  }
 0x154   : > { %v408_v34 = vpop.f32.mrf.mxu1 }
 0x155 PF: > { %p606_p9 = scmp.ge.s32.totalorder %s742_s21, 2  ;;  %s438_s25 = sand.u32 1, %s730_s18  }
 0x156   : > { %s439_s6 = scalar_lea.sflag [#allocation4], %s438_s25 }
 0x157   : > { %p601_p10 = pnand %p606_p9, %p819_p6 }
 0x159   : > { %p602_p11 = pneg %p601_p10 }
 0x15b   : > { %725 = dma.done.wait (%p602_p11), %s439_s6, 128  }
 0x15c   : > { %727 = vsyncadd (%p602_p11), %s439_s6, 4294967168  ;;  %p16_p12 = scmp.ge.s32.totalorder %s802_s24, 4   ;;  %s910_s18 = smov %s734_s19 }
 0x15d   : > { %s911_s19 = smov %s738_s20  ;;  %s912_s20 = smov %s813_s27 }
 0x15e   : > { %s913_s21 = smov %s802_s24  ;;  %18 = sbr.rel (!%p16_p12) target bundleno = 4 (0x4), region = 80 }
 0x163   :  { %445 = vsyncpa [#allocation3], 1 }
 0x164   :  { %447 = vsyncpa [#allocation3 + $0x1], 1 }
 0x165   :  { %448 = vsyncpa [#allocation4], 1 }
 0x166   :  { %450 = vsyncpa [#allocation4 + $0x1], 1 }

</bundles_post_ra>
